<compile_context>
chip_gen: v7x
topology: tpu7x:2x2x1
jax: 0.10.0
libtpu: 0.0.40
codegen_flags: <defaults>
</compile_context>

<pallas_src>
import jax
import jax.numpy as jnp
from jax.experimental import pallas as pl
from jax.experimental.pallas import tpu as pltpu

LANE = 128


def _round_up(x, m=LANE):
    return ((x + m - 1) // m) * m


def fused_sage_kernel(a_ref, h_ref, w0_ref, w1_ref, o_ref):
    """Two fused SAGE layers, intermediate kept on-chip.

    a_ref : [N, N]          bf16 row-normalized adjacency (mean aggregator)
    h_ref : [N, FPAD]       bf16 zero-padded node features
    w0_ref: [2*FPAD, HPAD]  bf16 [W_self_0 ; W_neigh_0] stacked along K, col-padded
    w1_ref: [2*HPAD, CPAD]  bf16 [W_self_1 ; W_neigh_1] stacked along K, col-padded
    o_ref : [N, CPAD]       f32 logits (columns >= n_classes are zero)
    """
    a = a_ref[...]
    h0 = h_ref[...]

    # ---- layer 0: mean aggregation + single wide-K matmul + ReLU ----------
    hn0 = jnp.dot(a, h0, preferred_element_type=jnp.float32)        # [N, FPAD]
    x0 = jnp.concatenate([h0, hn0.astype(jnp.bfloat16)], axis=1)    # [N, 2*FPAD]
    h1 = jnp.maximum(
        jnp.dot(x0, w0_ref[...], preferred_element_type=jnp.float32), 0.0)

    # ---- layer 1: intermediate h1 stays in VMEM/vregs ----------------------
    h1b = h1.astype(jnp.bfloat16)                                   # [N, HPAD]
    hn1 = jnp.dot(a, h1b, preferred_element_type=jnp.float32)       # [N, HPAD]
    x1 = jnp.concatenate([h1b, hn1.astype(jnp.bfloat16)], axis=1)   # [N, 2*HPAD]
    o_ref[...] = jnp.dot(x1, w1_ref[...], preferred_element_type=jnp.float32)


def _pack_weights(w_self, w_neigh, k_pad, n_pad):
    """Stack [W_self ; W_neigh] along K, zero-padding K halves to k_pad and
    output columns to n_pad. Returns bf16 [2*k_pad, n_pad]."""
    k, n = w_self.shape
    w = jnp.zeros((2 * k_pad, n_pad), jnp.float32)
    w = w.at[:k, :n].set(w_self)
    w = w.at[k_pad:k_pad + k, :n].set(w_neigh)
    return w.astype(jnp.bfloat16)


def prepare_inputs(a_norm, features, params):
    n, f_in = features.shape
    n_hidden = params["w_self_0"].shape[1]
    n_classes = params["w_self_1"].shape[1]
    fpad = _round_up(f_in)
    hpad = _round_up(n_hidden)
    cpad = _round_up(n_classes)

    a_bf = a_norm.astype(jnp.bfloat16)
    h_bf = jnp.pad(features, ((0, 0), (0, fpad - f_in))).astype(jnp.bfloat16)
    w0 = _pack_weights(params["w_self_0"], params["w_neigh_0"], fpad, hpad)
    w1 = _pack_weights(params["w_self_1"], params["w_neigh_1"], hpad, cpad)
    return a_bf, h_bf, w0, w1, cpad, n_classes


def graphsage_forward(a_norm, features, params):
    """Fused 2-layer GraphSAGE forward (mean aggregator, no bias)."""
    a_bf, h_bf, w0, w1, cpad, n_classes = prepare_inputs(a_norm, features, params)
    n = features.shape[0]
    out = pl.pallas_call(
        fused_sage_kernel,
        out_shape=jax.ShapeDtypeStruct((n, cpad), jnp.float32),
        in_specs=[
            pl.BlockSpec(memory_space=pltpu.MemorySpace.VMEM),  # A       [N, N]
            pl.BlockSpec(memory_space=pltpu.MemorySpace.VMEM),  # H       [N, FPAD]
            pl.BlockSpec(memory_space=pltpu.MemorySpace.VMEM),  # W0_cat  [2*FPAD, HPAD]
            pl.BlockSpec(memory_space=pltpu.MemorySpace.VMEM),  # W1_cat  [2*HPAD, CPAD]
        ],
        out_specs=pl.BlockSpec(memory_space=pltpu.MemorySpace.VMEM),
    )(a_bf, h_bf, w0, w1)
    return out[:, :n_classes]


def xavier_uniform(key, shape):
    fan_in, fan_out = shape
    limit = jnp.sqrt(6.0 / (fan_in + fan_out))
    return jax.random.uniform(key, shape, jnp.float32, -limit, limit)


def reference_bf16(a_norm, features, params):
    """Pure-JAX reference of the exact padded/bf16 math run by the kernel."""
    a, h0, w0, w1, _, n_classes = prepare_inputs(a_norm, features, params)
    hn0 = jnp.dot(a, h0, preferred_element_type=jnp.float32)
    x0 = jnp.concatenate([h0, hn0.astype(jnp.bfloat16)], axis=1)
    h1 = jnp.maximum(jnp.dot(x0, w0, preferred_element_type=jnp.float32), 0.0)
    h1b = h1.astype(jnp.bfloat16)
    hn1 = jnp.dot(a, h1b, preferred_element_type=jnp.float32)
    x1 = jnp.concatenate([h1b, hn1.astype(jnp.bfloat16)], axis=1)
    out = jnp.dot(x1, w1, preferred_element_type=jnp.float32)
    return out[:, :n_classes]


def reference_f32(a_norm, features, params):
    """Full-precision reference of the original module semantics."""
    h = features
    h = jnp.maximum(
        h @ params["w_self_0"] + (a_norm @ h) @ params["w_neigh_0"], 0.0)
    h = h @ params["w_self_1"] + (a_norm @ h) @ params["w_neigh_1"]
    return h


if __name__ == "__main__":
    # Small GraphSAGE configuration.
    N = 128          # number of nodes (block with identical src/dst node set)
    IN_FEATS = 64
    N_HIDDEN = 32
    N_CLASSES = 16

    key = jax.random.PRNGKey(0)
    k_feat, k_adj, k0, k1, k2, k3 = jax.random.split(key, 6)

    # Node features [N, IN_FEATS].
    features = jax.random.normal(k_feat, (N, IN_FEATS), jnp.float32)

    # Random directed graph -> row-normalized (mean aggregator) dense adjacency.
    adj = (jax.random.uniform(k_adj, (N, N)) < 0.1).astype(jnp.float32)
    deg = jnp.maximum(adj.sum(axis=1, keepdims=True), 1.0)
    a_norm = adj / deg  # A_norm[i, j] = 1/deg(i) if edge j -> i

    # Deterministic Xavier-uniform parameters (SAGEConv: fc_self + fc_neigh, no bias).
    params = {
        "w_self_0": xavier_uniform(k0, (IN_FEATS, N_HIDDEN)),
        "w_neigh_0": xavier_uniform(k1, (IN_FEATS, N_HIDDEN)),
        "w_self_1": xavier_uniform(k2, (N_HIDDEN, N_CLASSES)),
        "w_neigh_1": xavier_uniform(k3, (N_HIDDEN, N_CLASSES)),
    }

    out = jax.block_until_ready(graphsage_forward(a_norm, features, params))

    ref_bf = reference_bf16(a_norm, features, params)
    ref_fp = reference_f32(a_norm, features, params)

    assert out.shape == (N, N_CLASSES)
    # Tight check against a reference performing the identical bf16/f32-accum math.
    assert jnp.allclose(out, ref_bf, atol=5e-3, rtol=5e-3), \
        float(jnp.max(jnp.abs(out - ref_bf)))
    # Loose check against the full-precision module semantics (bf16 operand rounding).
    assert jnp.allclose(out, ref_fp, atol=1e-1, rtol=1e-1), \
        float(jnp.max(jnp.abs(out - ref_fp)))
    print("KERNEL_OK")
</pallas_src>

<mosaic_0001>
module attributes {stable_mosaic.version = 11 : i64} {
  func.func @fused_sage_kernel(%arg0: memref<128x128xbf16, #tpu.memory_space<vmem>>, %arg1: memref<128x128xbf16, #tpu.memory_space<vmem>>, %arg2: memref<256x128xbf16, #tpu.memory_space<vmem>>, %arg3: memref<256x128xbf16, #tpu.memory_space<vmem>>, %arg4: memref<128x128xf32, #tpu.memory_space<vmem>>) attributes {dimension_semantics = [], scalar_prefetch = 0 : i64, scratch_operands = 0 : i64, tpu.core_type = #tpu.core_type<tc>} {
    %c0 = arith.constant 0 : index
    %c0_0 = arith.constant 0 : index
    %0 = vector.load %arg0[%c0, %c0_0] : memref<128x128xbf16, #tpu.memory_space<vmem>>, vector<128x128xbf16>
    %c0_1 = arith.constant 0 : index
    %c0_2 = arith.constant 0 : index
    %1 = vector.load %arg1[%c0_1, %c0_2] : memref<128x128xbf16, #tpu.memory_space<vmem>>, vector<128x128xbf16>
    %cst = arith.constant dense<0.000000e+00> : vector<128x128xf32>
    %2 = tpu.matmul %0, %1, %cst {dimension_numbers = #tpu.dot_dimension_numbers<[1], [0], [0], [1], [0, 0, 1, 1], [], []>} : vector<128x128xbf16>, vector<128x128xbf16>, vector<128x128xf32> -> vector<128x128xf32>
    %3 = arith.truncf %2 : vector<128x128xf32> to vector<128x128xbf16>
    %4 = tpu.concatenate %1, %3 in 1 : vector<128x128xbf16>, vector<128x128xbf16> -> vector<128x256xbf16>
    %c0_3 = arith.constant 0 : index
    %c0_4 = arith.constant 0 : index
    %5 = vector.load %arg2[%c0_3, %c0_4] : memref<256x128xbf16, #tpu.memory_space<vmem>>, vector<256x128xbf16>
    %cst_5 = arith.constant dense<0.000000e+00> : vector<128x128xf32>
    %6 = tpu.matmul %4, %5, %cst_5 {dimension_numbers = #tpu.dot_dimension_numbers<[1], [0], [0], [1], [0, 0, 1, 1], [], []>} : vector<128x256xbf16>, vector<256x128xbf16>, vector<128x128xf32> -> vector<128x128xf32>
    %cst_6 = arith.constant 0.000000e+00 : f32
    %7 = vector.broadcast %cst_6 : f32 to vector<128x128xf32>
    %8 = arith.maximumf %6, %7 : vector<128x128xf32>
    %9 = arith.truncf %8 : vector<128x128xf32> to vector<128x128xbf16>
    %cst_7 = arith.constant dense<0.000000e+00> : vector<128x128xf32>
    %10 = tpu.matmul %0, %9, %cst_7 {dimension_numbers = #tpu.dot_dimension_numbers<[1], [0], [0], [1], [0, 0, 1, 1], [], []>} : vector<128x128xbf16>, vector<128x128xbf16>, vector<128x128xf32> -> vector<128x128xf32>
    %11 = arith.truncf %10 : vector<128x128xf32> to vector<128x128xbf16>
    %12 = tpu.concatenate %9, %11 in 1 : vector<128x128xbf16>, vector<128x128xbf16> -> vector<128x256xbf16>
    %c0_8 = arith.constant 0 : index
    %c0_9 = arith.constant 0 : index
    %13 = vector.load %arg3[%c0_8, %c0_9] : memref<256x128xbf16, #tpu.memory_space<vmem>>, vector<256x128xbf16>
    %cst_10 = arith.constant dense<0.000000e+00> : vector<128x128xf32>
    %14 = tpu.matmul %12, %13, %cst_10 {dimension_numbers = #tpu.dot_dimension_numbers<[1], [0], [0], [1], [0, 0, 1, 1], [], []>} : vector<128x256xbf16>, vector<256x128xbf16>, vector<128x128xf32> -> vector<128x128xf32>
    %c0_11 = arith.constant 0 : index
    %c0_12 = arith.constant 0 : index
    %15 = vector.load %arg4[%c0_11, %c0_12] : memref<128x128xf32, #tpu.memory_space<vmem>>, vector<128x128xf32>
    tpu.vector_store %arg4[%c0_11, %c0_12], %14 {strides = array<i32>} : memref<128x128xf32, #tpu.memory_space<vmem>>, vector<128x128xf32>,
    return
  }
}

</mosaic_0001>

<bundles_post_ra>
// kernel: tpu_custom_call.1
= control target key start
LH: loop header
LB: loop body
LE: loop exit
PB: predicated region body
PF: predicated region fallthrough
CT: control target
= control target key end

     0   :  { %9 = vsyncpa [#allocation3], 0  ;;  %s1596_s0 = inlined_call_operand.hbm [shape: bf16[128,128], index: 0, kind: input, shape index: {}]   ;;  %s1597_s1 = inlined_call_operand.hbm [shape: bf16[128,128], index: 1, kind: input, shape index: {}]   ;;  %s1598_s2 = inlined_call_operand.hbm [shape: bf16[256,128], index: 2, kind: input, shape index: {}]   ;;  %s1599_s3 = inlined_call_operand.hbm [shape: bf16[256,128], index: 3, kind: input, shape index: {}]   ;;  %s1600_s4 = inlined_call_operand.hbm [shape: f32[128,128], index: 4, kind: output, shape index: {}]  }
   0x1   :  { %10 = vsyncpa [#allocation6], 0 }
   0x2   :  { %11 = vsyncpa [#allocation9], 0 }
   0x3   :  { %12 = vsyncpa [#allocation4], 0  ;;  %s1368_s15 = smov [#allocation5]   ;;  %s1369_s17 = smov [#allocation2]  }
   0x4   :  { %s30_s16 = sshll.u32 %s1368_s15, 4  ;;  %s18_s18 = sshll.u32 %s1369_s17, 4  ;;  %s31_s16 = int_to_ptr.vmem [resolvable:$true] %s30_s16  ;;  %s1402_s18 = int_to_ptr.vmem [resolvable:$true] %s18_s18 }
   0x5   :  { %s1250_s21 = scalar_lea.hbm %s1597_s1, 1024 }
   0x6   :  { %p1251_p0 = scmp.ne.s32.totalorder %s1597_s1, %s1250_s21  ;;  %p1254_p1 = scmp.lt.u32.totalorder %s1250_s21, %s1597_s1 }
   0x8   :  { %p1256_p2 = pnand %p1254_p1, %p1251_p0 }
   0xa   :  { %1259 = shalt.err (!%p1256_p2)
}
   0xb   :  { %s1260_s26 = scalar_lea.vmem %s31_s16, 1024  ;;  %p1265_p4 = scmp.lt.s32.totalorder %s31_s16, %s31_s16 }
   0xc   :  { %p1261_p3 = scmp.ne.s32.totalorder %s31_s16, %s1260_s26  ;;  %p1266_p5 = scmp.lt.s32.totalorder %s1260_s26, %s1260_s26 }
   0xe   :  { %p1267_p6 = por %p1266_p5, %p1265_p4 }
  0x10   :  { %p1268_p7 = pnand %p1267_p6, %p1261_p3 }
  0x12   :  { %1271 = shalt.err (!%p1268_p7)
}
  0x13   :  { %s1370_s27 = smov 64   ;;  %s1371_s28 = smov 4  }
  0x14   :  { %36 = dma.hbm_to_vmem [thread:$0]  %s1597_s1, 1024, %s31_s16, [#allocation6], %s1370_s27, %s1370_s27, %s1371_s28  }
  0x15   :  { %s1272_s7 = scalar_lea.hbm %s1596_s0, 1024 }
  0x16   :  { %p1273_p8 = scmp.ne.s32.totalorder %s1596_s0, %s1272_s7  ;;  %p1276_p9 = scmp.lt.u32.totalorder %s1272_s7, %s1596_s0 }
  0x18   :  { %p1278_p10 = pnand %p1276_p9, %p1273_p8 }
  0x1a   :  { %1281 = shalt.err (!%p1278_p10)
}
  0x1b   :  { %s1282_s12 = scalar_lea.vmem %s1402_s18, 1024  ;;  %p1287_p12 = scmp.lt.s32.totalorder %s1402_s18, %s1402_s18 }
  0x1c   :  { %p1283_p11 = scmp.ne.s32.totalorder %s1402_s18, %s1282_s12  ;;  %p1288_p13 = scmp.lt.s32.totalorder %s1282_s12, %s1282_s12 }
  0x1e   :  { %p1289_p0 = por %p1288_p13, %p1287_p12 }
  0x20   :  { %p1290_p1 = pnand %p1289_p0, %p1283_p11 }
  0x22   :  { %1293 = shalt.err (!%p1290_p1)
}
  0x23   :  { %24 = dma.hbm_to_vmem [thread:$0]  %s1596_s0, 1024, %s1402_s18, [#allocation3], %s1370_s27, %s1370_s27, %s1371_s28  }
  0x24   :  { %s1372_s14 = smov [#allocation7]   ;;  %s1373_s16 = smov [#allocation8]  }
  0x25   :  { %s42_s15 = sshll.u32 %s1372_s14, 4  ;;  %s54_s17 = sshll.u32 %s1373_s16, 4  ;;  %s43_s15 = int_to_ptr.vmem [resolvable:$true] %s42_s15  ;;  %s1439_s17 = int_to_ptr.vmem [resolvable:$true] %s54_s17 }
  0x26   :  { %s1294_s21 = scalar_lea.hbm %s1598_s2, 2048 }
  0x27   :  { %p1295_p2 = scmp.ne.s32.totalorder %s1598_s2, %s1294_s21  ;;  %p1298_p3 = scmp.lt.u32.totalorder %s1294_s21, %s1598_s2 }
  0x29   :  { %p1300_p4 = pnand %p1298_p3, %p1295_p2 }
  0x2b   :  { %1303 = shalt.err (!%p1300_p4)
}
  0x2c   :  { %s1304_s0 = scalar_lea.vmem %s43_s15, 2048  ;;  %p1309_p6 = scmp.lt.s32.totalorder %s43_s15, %s43_s15 }
  0x2d   :  { %p1305_p5 = scmp.ne.s32.totalorder %s43_s15, %s1304_s0  ;;  %p1310_p7 = scmp.lt.s32.totalorder %s1304_s0, %s1304_s0 }
  0x2f   :  { %p1311_p8 = por %p1310_p7, %p1309_p6 }
  0x31   :  { %p1312_p9 = pnand %p1311_p8, %p1305_p5 }
  0x33   :  { %1315 = shalt.err (!%p1312_p9)
}
  0x34   :  { %48 = dma.hbm_to_vmem [thread:$0]  %s1598_s2, 2048, %s43_s15, [#allocation6], %s1370_s27, %s1370_s27, %s1371_s28  }
  0x35   :  { %s1316_s5 = scalar_lea.hbm %s1599_s3, 2048 }
  0x36   :  { %p1317_p10 = scmp.ne.s32.totalorder %s1599_s3, %s1316_s5  ;;  %p1320_p11 = scmp.lt.u32.totalorder %s1316_s5, %s1599_s3 }
  0x38   :  { %p1322_p12 = pnand %p1320_p11, %p1317_p10 }
  0x3a   :  { %1325 = shalt.err (!%p1322_p12)
}
  0x3b   :  { %s1326_s10 = scalar_lea.vmem %s1439_s17, 2048  ;;  %p1331_p0 = scmp.lt.s32.totalorder %s1439_s17, %s1439_s17 }
  0x3c   :  { %p1327_p13 = scmp.ne.s32.totalorder %s1439_s17, %s1326_s10  ;;  %p1332_p1 = scmp.lt.s32.totalorder %s1326_s10, %s1326_s10 }
  0x3e   :  { %p1333_p2 = por %p1332_p1, %p1331_p0 }
  0x40   :  { %p1334_p3 = pnand %p1333_p2, %p1327_p13 }
  0x42   :  { %1337 = shalt.err (!%p1334_p3)
}
  0x43   :  { %60 = dma.hbm_to_vmem [thread:$0]  %s1599_s3, 2048, %s1439_s17, [#allocation9], %s1370_s27, %s1370_s27, %s1371_s28  }
  0x44   :  { %1360 = dma.done.wait [#allocation3], 1024  }
  0x45   :  { %1361 = vsyncadd [#allocation3], 4294966272 }
  0x46   :  { %1362 = dma.done.wait [#allocation6], 3072  }
  0x47   :  { %1363 = vsyncadd [#allocation6], 4294964224 }
  0x48   :  { %1364 = dma.done.wait [#allocation9], 2048  }
  0x49   :  { %1365 = vsyncadd [#allocation9], 4294965248  ;;  %v1476_v0 = vld [vmem:[#allocation5] sm:$0xff]   ;;  %v1478_v1 = vld [vmem:[#allocation5 + $0x8] sm:$0xff]   ;;  %s1374_s3 = smov [#allocation10]  }
  0x4a   :  { %1129 = vmatprep.subr.bf16.mxu1 %v1476_v0  ;;  %v1483_v2 = vld [vmem:[#allocation5 + $0x10] sm:$0xff]   ;;  %v1486_v3 = vld [vmem:[#allocation5 + $0x18] sm:$0xff]   ;;  %v1210_v4 = vld [vmem:[#allocation2] sm:$0xff]   ;;  %s907_s27 = sshll.u32 %s1374_s3, 4  ;;  %s908_s27 = int_to_ptr.vmem [resolvable:$true] %s907_s27 }
  0x4b   :  { %1130 = vmatpush3.bf16.msra.mxu1 %v1476_v0  ;;  %1145 = vmatprep.mubr.bf16.mxu1 %v1210_v4  ;;  %v1491_v5 = vld [vmem:[#allocation5 + $0x20] sm:$0xff]   ;;  %v1495_v6 = vld [vmem:[#allocation5 + $0x28] sm:$0xff]   ;;  %v1499_v7 = vld [vmem:[#allocation5 + $0x30] sm:$0xff]   ;;  %s1338_s28 = scalar_lea.vmem %s908_s27, 2048  ;;  %p1343_p5 = scmp.lt.s32.totalorder %s908_s27, %s908_s27 }
  0x4c   :  { %1131 = vmatprep.subr.bf16.mxu1 %v1478_v1  ;;  %1177 = vmatprep.mubr.bf16.mxu0 %v1210_v4  ;;  %v1503_v8 = vld [vmem:[#allocation5 + $0x38] sm:$0xff]   ;;  %v1507_v9 = vld [vmem:[#allocation2 + $0x8] sm:$0xff]   ;;  %v1218_v10 = vld [vmem:[#allocation7 + $0x40] sm:$0xff]   ;;  %p1339_p4 = scmp.ne.s32.totalorder %s908_s27, %s1338_s28  ;;  %p1344_p6 = scmp.lt.s32.totalorder %s1338_s28, %s1338_s28 }
  0x4d   :  { %v1509_v11 = vld [vmem:[#allocation2 + $0x10] sm:$0xff]   ;;  %v1219_v12 = vld [vmem:[#allocation7] sm:$0xff]   ;;  %v1220_v13 = vld [vmem:[#allocation7 + $0x48] sm:$0xff]  }
  0x4e   :  { %v1221_v14 = vld [vmem:[#allocation7 + $0x8] sm:$0xff]   ;;  %v1222_v15 = vld [vmem:[#allocation7 + $0x50] sm:$0xff]   ;;  %v1514_v16 = vld [vmem:[#allocation2 + $0x18] sm:$0xff]   ;;  %p1345_p7 = por %p1344_p6, %p1343_p5 }
  0x4f   :  { %1132 = vmatpush3.bf16.msra.mxu1 %v1478_v1  ;;  %v1516_v17 = vld [vmem:[#allocation2 + $0x20] sm:$0xff]   ;;  %v1223_v18 = vld [vmem:[#allocation7 + $0x10] sm:$0xff]   ;;  %v1224_v19 = vld [vmem:[#allocation7 + $0x58] sm:$0xff]  }
  0x50   :  { %1133 = vmatprep.subr.bf16.mxu1 %v1483_v2  ;;  %v1225_v20 = vld [vmem:[#allocation7 + $0x18] sm:$0xff]   ;;  %v1226_v21 = vld [vmem:[#allocation7 + $0x60] sm:$0xff]   ;;  %v1520_v22 = vld [vmem:[#allocation2 + $0x28] sm:$0xff]   ;;  %p1346_p8 = pnand %p1345_p7, %p1339_p4 }
  0x51   :  { %v1522_v23 = vld [vmem:[#allocation2 + $0x30] sm:$0xff]   ;;  %v1227_v24 = vld [vmem:[#allocation7 + $0x20] sm:$0xff]   ;;  %v1228_v25 = vld [vmem:[#allocation7 + $0x68] sm:$0xff]  }
  0x52   :  { %v1229_v26 = vld [vmem:[#allocation7 + $0x28] sm:$0xff]   ;;  %v1230_v27 = vld [vmem:[#allocation7 + $0x70] sm:$0xff]   ;;  %v1526_v28 = vld [vmem:[#allocation2 + $0x38] sm:$0xff]  }
  0x53   :  { %1134 = vmatpush3.bf16.msra.mxu1 %v1483_v2  ;;  %v1231_v29 = vld [vmem:[#allocation7 + $0x30] sm:$0xff]   ;;  %v1232_v30 = vld [vmem:[#allocation7 + $0x78] sm:$0xff]  }
  0x54   :  { %1135 = vmatprep.subr.bf16.mxu1 %v1486_v3  ;;  %v1233_v31 = vld [vmem:[#allocation7 + $0x38] sm:$0xff]  }
  0x57   :  { %1136 = vmatpush3.bf16.msra.mxu1 %v1486_v3 }
  0x58   :  { %1137 = vmatprep.subr.bf16.mxu1 %v1491_v5 }
  0x5b   :  { %1138 = vmatpush3.bf16.msra.mxu1 %v1491_v5 }
  0x5c   :  { %1139 = vmatprep.subr.bf16.mxu1 %v1495_v6 }
  0x5f   :  { %1140 = vmatpush3.bf16.msra.mxu1 %v1495_v6 }
  0x60   :  { %1141 = vmatprep.subr.bf16.mxu1 %v1499_v7 }
  0x63   :  { %1142 = vmatpush3.bf16.msra.mxu1 %v1499_v7 }
  0x64   :  { %1143 = vmatprep.subr.bf16.mxu1 %v1503_v8 }
  0x67   :  { %1144 = vmatpush3.bf16.msra.mxu1 %v1503_v8 }
  0x68   :  { %985 = vmatprep.subr.bf16.mxu1 %v1218_v10 }
  0x6a   :  { %1146 = vmatmul.mubr.bf16.vlgmr.msra.gmra.mrb[0].mxu1 %v1507_v9 }
  0x6b   :  { %1149 = vmatprep.mubr.bf16.mxu1 %v1509_v11  ;;  %986 = vmatpush3.bf16.msra.mxu1 %v1219_v12 }
  0x6c   :  { %987 = vmatprep.subr.bf16.mxu1 %v1220_v13 }
  0x6f   :  { %988 = vmatpush3.bf16.msra.mxu1 %v1221_v14 }
  0x70   :  { %989 = vmatprep.subr.bf16.mxu1 %v1222_v15 }
  0x72   :  { %1150 = vmatmul.mubr.bf16.gmra.mrb[4].mxu1 %v1514_v16 }
  0x73   :  { %1153 = vmatprep.mubr.bf16.mxu1 %v1516_v17  ;;  %990 = vmatpush3.bf16.msra.mxu1 %v1223_v18 }
  0x74   :  { %991 = vmatprep.subr.bf16.mxu1 %v1224_v19 }
  0x77   :  { %992 = vmatpush3.bf16.msra.mxu1 %v1225_v20 }
  0x78   :  { %993 = vmatprep.subr.bf16.mxu1 %v1226_v21 }
  0x7a   :  { %1154 = vmatmul.mubr.bf16.gmra.mrb[8].mxu1 %v1520_v22 }
  0x7b   :  { %1157 = vmatprep.mubr.bf16.mxu1 %v1522_v23  ;;  %994 = vmatpush3.bf16.msra.mxu1 %v1227_v24 }
  0x7c   :  { %995 = vmatprep.subr.bf16.mxu1 %v1228_v25 }
  0x7f   :  { %996 = vmatpush3.bf16.msra.mxu1 %v1229_v26 }
  0x80   :  { %997 = vmatprep.subr.bf16.mxu1 %v1230_v27 }
  0x82   :  { %1158 = vmatmul.mubr.bf16.gmra.mrb[12].mxu1 %v1526_v28 }
  0x83   :  { %998 = vmatpush3.bf16.msra.mxu1 %v1231_v29 }
  0x84   :  { %999 = vmatprep.subr.bf16.mxu1 %v1232_v30 }
  0x87   :  { %1000 = vmatpush3.bf16.msra.mxu1 %v1233_v31 }
 0x13d   :  { %v1147_v32 = vpop.f32.mrb[0].mxu1 }
 0x13e   :  { %v236_v33 = vpop.f32.mrb[1].mxu1 }
 0x13f   :  { %v1148_v34 = vpop.f32.mrb[2].mxu1 }
 0x140   :  { %v300_v35 = vpack.c.bf16 %v1148_v34, %v1147_v32  ;;  %v239_v36 = vpop.f32.mrb[3].mxu1 }
 0x141   :  { %v299_v37 = vpack.c.bf16 %v239_v36, %v236_v33 }
 0x143   :  { %467 = vmatprep.mubr.bf16.mxu1 %v299_v37 }
 0x144   :  { %468 = vmatmul.mubr.bf16.vlgmr.msra.gmra.mrb[16].mxu1 %v1476_v0 }
 0x145   :  { %475 = vmatprep.mubr.bf16.mxu1 %v300_v35  ;;  %v1151_v38 = vpop.f32.mrb[4].mxu1 }
 0x146   :  { %v252_v39 = vpop.f32.mrb[5].mxu1 }
 0x147   :  { %v1152_v40 = vpop.f32.mrb[6].mxu1 }
 0x148   :  { %v302_v41 = vpack.c.bf16 %v1152_v40, %v1151_v38  ;;  %v255_v42 = vpop.f32.mrb[7].mxu1 }
 0x149   :  { %v301_v43 = vpack.c.bf16 %v255_v42, %v252_v39 }
 0x14c   :  { %476 = vmatmul.mubr.bf16.gmra.mrb[20].mxu1 %v1478_v1 }
 0x14d   :  { %483 = vmatprep.mubr.bf16.mxu1 %v301_v43  ;;  %v1155_v44 = vpop.f32.mrb[8].mxu1 }
 0x14e   :  { %v268_v45 = vpop.f32.mrb[9].mxu1 }
 0x14f   :  { %v1156_v46 = vpop.f32.mrb[10].mxu1 }
 0x150   :  { %v304_v47 = vpack.c.bf16 %v1156_v46, %v1155_v44  ;;  %v271_v48 = vpop.f32.mrb[11].mxu1 }
 0x151   :  { %v303_v49 = vpack.c.bf16 %v271_v48, %v268_v45 }
 0x154   :  { %484 = vmatmul.mubr.bf16.gmra.mrb[24].mxu1 %v1483_v2 }
 0x155   :  { %491 = vmatprep.mubr.bf16.mxu1 %v302_v41  ;;  %v1159_v50 = vpop.f32.mrb[12].mxu1 }
 0x156   :  { %v284_v51 = vpop.f32.mrb[13].mxu1 }
 0x157   :  { %v1160_v52 = vpop.f32.mrb[14].mxu1 }
 0x158   :  { %v306_v53 = vpack.c.bf16 %v1160_v52, %v1159_v50  ;;  %v287_v54 = vpop.f32.mrb[15].mxu1 }
 0x159   :  { %v305_v55 = vpack.c.bf16 %v287_v54, %v284_v51 }
 0x15c   :  { %492 = vmatmul.mubr.bf16.gmra.mrb[28].mxu1 %v1486_v3 }
 0x15d   :  { %499 = vmatprep.mubr.bf16.mxu1 %v303_v49 }
 0x164   :  { %500 = vmatmul.mubr.bf16.gmra.mrb[32].mxu1 %v1491_v5 }
 0x165   :  { %507 = vmatprep.mubr.bf16.mxu1 %v304_v47 }
 0x16c   :  { %508 = vmatmul.mubr.bf16.gmra.mrb[36].mxu1 %v1495_v6 }
 0x16d   :  { %515 = vmatprep.mubr.bf16.mxu1 %v305_v55 }
 0x174   :  { %516 = vmatmul.mubr.bf16.gmra.mrb[40].mxu1 %v1499_v7 }
 0x175   :  { %523 = vmatprep.mubr.bf16.mxu1 %v306_v53 }
 0x17c   :  { %524 = vmatmul.mubr.bf16.gmra.mrb[44].mxu1 %v1503_v8 }
 0x217   :  { %v1001_v56 = vpop.f32.mrb[16].mxu1 }
 0x218   :  { %v1002_v57 = vpop.f32.mrb[17].mxu1 }
 0x219   :  { %v1003_v58 = vadd.f32 %v1002_v57, %v1001_v56  ;;  %v1004_v59 = vpop.f32.mrb[18].mxu1 }
 0x21a   :  { %v1005_v60 = vpop.f32.mrb[19].mxu1 }
 0x21b   :  { %v1006_v61 = vadd.f32 %v1005_v60, %v1004_v59  ;;  %v532_v62 = vmax.f32 %v1003_v58, 0.0 }
 0x21d   :  { %v533_v63 = vmax.f32 %v1006_v61, 0.0 }
 0x21f   :  { %v1537_v0 = vpack.c.bf16 %v533_v63, %v532_v62  ;;  %v1007_v1 = vpop.f32.mrb[20].mxu1 }
 0x220   :  { %v1008_v2 = vpop.f32.mrb[21].mxu1 }
 0x221   :  { %v1009_v3 = vadd.f32 %v1008_v2, %v1007_v1  ;;  %v1010_v4 = vpop.f32.mrb[22].mxu1  ;;  %1161 = vmatprep.subr.bf16.mxu0 %v1537_v0 }
 0x222   :  { %v1011_v5 = vpop.f32.mrb[23].mxu1  ;;  %1162 = vmatpush3.bf16.msra.mxu0 %v1537_v0 }
 0x223   :  { %v1012_v6 = vadd.f32 %v1011_v5, %v1010_v4  ;;  %v534_v7 = vmax.f32 %v1009_v3, 0.0 }
 0x225   :  { %v535_v8 = vmax.f32 %v1012_v6, 0.0 }
 0x227   :  { %v1541_v10 = vpack.c.bf16 %v535_v8, %v534_v7  ;;  %v1013_v12 = vpop.f32.mrb[24].mxu1  ;;  %v1234_v8 = vld [vmem:[#allocation8 + $0x40] sm:$0xff]  }
 0x228   :  { %v1014_v13 = vpop.f32.mrb[25].mxu1 }
 0x229   :  { %v1015_v14 = vadd.f32 %v1014_v13, %v1013_v12  ;;  %v1016_v15 = vpop.f32.mrb[26].mxu1  ;;  %1163 = vmatprep.subr.bf16.mxu0 %v1541_v10  ;;  %v1235_v12 = vld [vmem:[#allocation8] sm:$0xff]   ;;  %v1236_v13 = vld [vmem:[#allocation8 + $0x48] sm:$0xff]  }
 0x22a   :  { %v1017_v18 = vpop.f32.mrb[27].mxu1  ;;  %1164 = vmatpush3.bf16.msra.mxu0 %v1541_v10 }
 0x22b   :  { %v1018_v19 = vadd.f32 %v1017_v18, %v1016_v15  ;;  %v536_v20 = vmax.f32 %v1015_v14, 0.0  ;;  %v1237_v14 = vld [vmem:[#allocation8 + $0x8] sm:$0xff]   ;;  %v1238_v15 = vld [vmem:[#allocation8 + $0x50] sm:$0xff]  }
 0x22c   :  { %v1239_v18 = vld [vmem:[#allocation8 + $0x10] sm:$0xff]  }
 0x22d   :  { %v537_v21 = vmax.f32 %v1018_v19, 0.0  ;;  %v1240_v19 = vld [vmem:[#allocation8 + $0x58] sm:$0xff]  }
 0x22f   :  { %v1545_v24 = vpack.c.bf16 %v537_v21, %v536_v20  ;;  %v1019_v25 = vpop.f32.mrb[28].mxu1  ;;  %v1241_v20 = vld [vmem:[#allocation8 + $0x18] sm:$0xff]   ;;  %v1242_v21 = vld [vmem:[#allocation8 + $0x60] sm:$0xff]  }
 0x230   :  { %v1020_v26 = vpop.f32.mrb[29].mxu1 }
 0x231   :  { %v1021_v27 = vadd.f32 %v1020_v26, %v1019_v25  ;;  %v1022_v29 = vpop.f32.mrb[30].mxu1  ;;  %1165 = vmatprep.subr.bf16.mxu0 %v1545_v24  ;;  %v1245_v25 = vld [vmem:[#allocation8 + $0x28] sm:$0xff]   ;;  %v1246_v26 = vld [vmem:[#allocation8 + $0x70] sm:$0xff]  }
 0x232   :  { %v1023_v30 = vpop.f32.mrb[31].mxu1  ;;  %1166 = vmatpush3.bf16.msra.mxu0 %v1545_v24 }
 0x233   :  { %v1024_v31 = vadd.f32 %v1023_v30, %v1022_v29  ;;  %v538_v32 = vmax.f32 %v1021_v27, 0.0  ;;  %v1249_v27 = vld [vmem:[#allocation8 + $0x38] sm:$0xff]  }
 0x235   :  { %v539_v33 = vmax.f32 %v1024_v31, 0.0 }
 0x237   :  { %v1549_v34 = vpack.c.bf16 %v539_v33, %v538_v32  ;;  %v1025_v35 = vpop.f32.mrb[32].mxu1 }
 0x238   :  { %v1026_v36 = vpop.f32.mrb[33].mxu1 }
 0x239   :  { %v1027_v37 = vadd.f32 %v1026_v36, %v1025_v35  ;;  %v1028_v38 = vpop.f32.mrb[34].mxu1  ;;  %1167 = vmatprep.subr.bf16.mxu0 %v1549_v34 }
 0x23a   :  { %v1029_v39 = vpop.f32.mrb[35].mxu1  ;;  %1168 = vmatpush3.bf16.msra.mxu0 %v1549_v34 }
 0x23b   :  { %v1030_v40 = vadd.f32 %v1029_v39, %v1028_v38  ;;  %v540_v41 = vmax.f32 %v1027_v37, 0.0 }
 0x23d   :  { %v541_v42 = vmax.f32 %v1030_v40, 0.0 }
 0x23f   :  { %v1553_v43 = vpack.c.bf16 %v541_v42, %v540_v41  ;;  %v1031_v44 = vpop.f32.mrb[36].mxu1 }
 0x240   :  { %v1032_v45 = vpop.f32.mrb[37].mxu1 }
 0x241   :  { %v1033_v46 = vadd.f32 %v1032_v45, %v1031_v44  ;;  %v1034_v47 = vpop.f32.mrb[38].mxu1  ;;  %1169 = vmatprep.subr.bf16.mxu0 %v1553_v43 }
 0x242   :  { %v1035_v48 = vpop.f32.mrb[39].mxu1  ;;  %1170 = vmatpush3.bf16.msra.mxu0 %v1553_v43 }
 0x243   :  { %v1036_v49 = vadd.f32 %v1035_v48, %v1034_v47  ;;  %v542_v50 = vmax.f32 %v1033_v46, 0.0 }
 0x245   :  { %v543_v51 = vmax.f32 %v1036_v49, 0.0 }
 0x247   :  { %v1557_v52 = vpack.c.bf16 %v543_v51, %v542_v50  ;;  %v1037_v53 = vpop.f32.mrb[40].mxu1 }
 0x248   :  { %v1038_v54 = vpop.f32.mrb[41].mxu1 }
 0x249   :  { %v1039_v55 = vadd.f32 %v1038_v54, %v1037_v53  ;;  %v1040_v56 = vpop.f32.mrb[42].mxu1  ;;  %1171 = vmatprep.subr.bf16.mxu0 %v1557_v52 }
 0x24a   :  { %v1041_v57 = vpop.f32.mrb[43].mxu1  ;;  %1172 = vmatpush3.bf16.msra.mxu0 %v1557_v52 }
 0x24b   :  { %v1042_v58 = vadd.f32 %v1041_v57, %v1040_v56  ;;  %v544_v59 = vmax.f32 %v1039_v55, 0.0 }
 0x24d   :  { %v545_v60 = vmax.f32 %v1042_v58, 0.0 }
 0x24f   :  { %v1561_v61 = vpack.c.bf16 %v545_v60, %v544_v59  ;;  %v1043_v62 = vpop.f32.mrb[44].mxu1 }
 0x250   :  { %v1044_v63 = vpop.f32.mrb[45].mxu1 }
 0x251   :  { %v1045_v1 = vadd.f32 %v1044_v63, %v1043_v62  ;;  %v1046_v2 = vpop.f32.mrb[46].mxu1  ;;  %1173 = vmatprep.subr.bf16.mxu0 %v1561_v61 }
 0x252   :  { %v1047_v3 = vpop.f32.mrb[47].mxu1  ;;  %1174 = vmatpush3.bf16.msra.mxu0 %v1561_v61 }
 0x253   :  { %v1048_v4 = vadd.f32 %v1047_v3, %v1046_v2  ;;  %v546_v5 = vmax.f32 %v1045_v1, 0.0 }
 0x255   :  { %v547_v6 = vmax.f32 %v1048_v4, 0.0 }
 0x257   :  { %v1565_v7 = vpack.c.bf16 %v547_v6, %v546_v5 }
 0x259   :  { %1175 = vmatprep.subr.bf16.mxu0 %v1565_v7 }
 0x25a   :  { %1176 = vmatpush3.bf16.msra.mxu0 %v1565_v7 }
 0x25b   :  { %1065 = vmatprep.subr.bf16.mxu0 %v1234_v8 }
 0x25d   :  { %1178 = vmatmul.mubr.bf16.vlgmr.msra.gmra.mrb[0].mxu0 %v1507_v9  ;;  %v1243_v9 = vld [vmem:[#allocation8 + $0x20] sm:$0xff]  }
 0x25e   :  { %1181 = vmatprep.mubr.bf16.mxu0 %v1509_v11  ;;  %1066 = vmatpush3.bf16.msra.mxu0 %v1235_v12  ;;  %v1244_v11 = vld [vmem:[#allocation8 + $0x68] sm:$0xff]  }
 0x25f   :  { %1067 = vmatprep.subr.bf16.mxu0 %v1236_v13 }
 0x262   :  { %1068 = vmatpush3.bf16.msra.mxu0 %v1237_v14 }
 0x263   :  { %1069 = vmatprep.subr.bf16.mxu0 %v1238_v15 }
 0x265   :  { %1182 = vmatmul.mubr.bf16.gmra.mrb[4].mxu0 %v1514_v16  ;;  %v1247_v16 = vld [vmem:[#allocation8 + $0x30] sm:$0xff]  }
 0x266   :  { %1185 = vmatprep.mubr.bf16.mxu0 %v1516_v17  ;;  %1070 = vmatpush3.bf16.msra.mxu0 %v1239_v18  ;;  %v1248_v17 = vld [vmem:[#allocation8 + $0x78] sm:$0xff]  }
 0x267   :  { %1071 = vmatprep.subr.bf16.mxu0 %v1240_v19 }
 0x26a   :  { %1072 = vmatpush3.bf16.msra.mxu0 %v1241_v20 }
 0x26b   :  { %1073 = vmatprep.subr.bf16.mxu0 %v1242_v21 }
 0x26d   :  { %1186 = vmatmul.mubr.bf16.gmra.mrb[8].mxu0 %v1520_v22 }
 0x26e   :  { %1189 = vmatprep.mubr.bf16.mxu0 %v1522_v23  ;;  %1074 = vmatpush3.bf16.msra.mxu0 %v1243_v9 }
 0x26f   :  { %1075 = vmatprep.subr.bf16.mxu0 %v1244_v11 }
 0x272   :  { %1076 = vmatpush3.bf16.msra.mxu0 %v1245_v25 }
 0x273   :  { %1077 = vmatprep.subr.bf16.mxu0 %v1246_v26 }
 0x275   :  { %1190 = vmatmul.mubr.bf16.gmra.mrb[12].mxu0 %v1526_v28 }
 0x276   :  { %1078 = vmatpush3.bf16.msra.mxu0 %v1247_v16 }
 0x277   :  { %1079 = vmatprep.subr.bf16.mxu0 %v1248_v17 }
 0x27a   :  { %1080 = vmatpush3.bf16.msra.mxu0 %v1249_v27 }
 0x330   :  { %v1179_v29 = vpop.f32.mrb[0].mxu0 }
 0x331   :  { %v590_v30 = vpop.f32.mrb[1].mxu0 }
 0x332   :  { %v1180_v31 = vpop.f32.mrb[2].mxu0 }
 0x333   :  { %v654_v22 = vpack.c.bf16 %v1180_v31, %v1179_v29  ;;  %v593_v32 = vpop.f32.mrb[3].mxu0 }
 0x334   :  { %v653_v23 = vpack.c.bf16 %v593_v32, %v590_v30 }
 0x336   :  { %821 = vmatprep.mubr.bf16.mxu0 %v653_v23 }
 0x337   :  { %822 = vmatmul.mubr.bf16.vlgmr.msra.gmra.mrb[16].mxu0 %v1537_v0 }
 0x338   :  { %829 = vmatprep.mubr.bf16.mxu0 %v654_v22  ;;  %v1183_v33 = vpop.f32.mrb[4].mxu0 }
 0x339   :  { %v606_v35 = vpop.f32.mrb[5].mxu0 }
 0x33a   :  { %v1184_v36 = vpop.f32.mrb[6].mxu0 }
 0x33b   :  { %v656_v37 = vpack.c.bf16 %v1184_v36, %v1183_v33  ;;  %v609_v28 = vpop.f32.mrb[7].mxu0 }
 0x33c   :  { %v655_v38 = vpack.c.bf16 %v609_v28, %v606_v35 }
 0x33f   :  { %830 = vmatmul.mubr.bf16.gmra.mrb[20].mxu0 %v1541_v10 }
 0x340   :  { %837 = vmatprep.mubr.bf16.mxu0 %v655_v38  ;;  %v1187_v39 = vpop.f32.mrb[8].mxu0 }
 0x341   :  { %v622_v40 = vpop.f32.mrb[9].mxu0 }
 0x342   :  { %v1188_v41 = vpop.f32.mrb[10].mxu0 }
 0x343   :  { %v658_v42 = vpack.c.bf16 %v1188_v41, %v1187_v39  ;;  %v625_v44 = vpop.f32.mrb[11].mxu0 }
 0x344   :  { %v657_v45 = vpack.c.bf16 %v625_v44, %v622_v40 }
 0x347   :  { %838 = vmatmul.mubr.bf16.gmra.mrb[24].mxu0 %v1545_v24 }
 0x348   :  { %845 = vmatprep.mubr.bf16.mxu0 %v656_v37  ;;  %v1191_v0 = vpop.f32.mrb[12].mxu0 }
 0x349   :  { %v638_v46 = vpop.f32.mrb[13].mxu0 }
 0x34a   :  { %v1192_v47 = vpop.f32.mrb[14].mxu0 }
 0x34b   :  { %v660_v48 = vpack.c.bf16 %v1192_v47, %v1191_v0  ;;  %v641_v49 = vpop.f32.mrb[15].mxu0 }
 0x34c   :  { %v659_v50 = vpack.c.bf16 %v641_v49, %v638_v46 }
 0x34f   :  { %846 = vmatmul.mubr.bf16.gmra.mrb[28].mxu0 %v1549_v34 }
 0x350   :  { %853 = vmatprep.mubr.bf16.mxu0 %v657_v45 }
 0x357   :  { %854 = vmatmul.mubr.bf16.gmra.mrb[32].mxu0 %v1553_v43 }
 0x358   :  { %861 = vmatprep.mubr.bf16.mxu0 %v658_v42 }
 0x35f   :  { %862 = vmatmul.mubr.bf16.gmra.mrb[36].mxu0 %v1557_v52 }
 0x360   :  { %869 = vmatprep.mubr.bf16.mxu0 %v659_v50 }
 0x367   :  { %870 = vmatmul.mubr.bf16.gmra.mrb[40].mxu0 %v1561_v61 }
 0x368   :  { %877 = vmatprep.mubr.bf16.mxu0 %v660_v48 }
 0x36f   :  { %878 = vmatmul.mubr.bf16.gmra.mrb[44].mxu0 %v1565_v7 }
 0x40a   :  { %v1081_v10 = vpop.f32.mrb[16].mxu0 }
 0x40b   :  { %v1082_v24 = vpop.f32.mrb[17].mxu0 }
 0x40c   :  { %v1083_v51 = vadd.f32 %v1082_v24, %v1081_v10  ;;  %v1084_v53 = vpop.f32.mrb[18].mxu0 }
 0x40d   :  { %v1085_v54 = vpop.f32.mrb[19].mxu0 }
 0x40e   :  { %886 = vst [vmem:[#allocation10] sm:$0xff] %v1083_v51  ;;  %v1086_v55 = vadd.f32 %v1085_v54, %v1084_v53 }
 0x410   :  { %887 = vst [vmem:[#allocation10 + $0x8] sm:$0xff] %v1086_v55 }
 0x412   :  { %v1087_v34 = vpop.f32.mrb[20].mxu0 }
 0x413   :  { %v1088_v56 = vpop.f32.mrb[21].mxu0 }
 0x414   :  { %v1089_v43 = vadd.f32 %v1088_v56, %v1087_v34  ;;  %v1090_v57 = vpop.f32.mrb[22].mxu0 }
 0x415   :  { %v1091_v58 = vpop.f32.mrb[23].mxu0 }
 0x416   :  { %888 = vst [vmem:[#allocation10 + $0x10] sm:$0xff] %v1089_v43  ;;  %v1092_v52 = vadd.f32 %v1091_v58, %v1090_v57 }
 0x418   :  { %889 = vst [vmem:[#allocation10 + $0x18] sm:$0xff] %v1092_v52 }
 0x41a   :  { %v1093_v59 = vpop.f32.mrb[24].mxu0 }
 0x41b   :  { %v1094_v60 = vpop.f32.mrb[25].mxu0 }
 0x41c   :  { %v1095_v61 = vadd.f32 %v1094_v60, %v1093_v59  ;;  %v1096_v62 = vpop.f32.mrb[26].mxu0 }
 0x41d   :  { %v1097_v63 = vpop.f32.mrb[27].mxu0 }
 0x41e   :  { %890 = vst [vmem:[#allocation10 + $0x20] sm:$0xff] %v1095_v61  ;;  %v1098_v1 = vadd.f32 %v1097_v63, %v1096_v62 }
 0x420   :  { %891 = vst [vmem:[#allocation10 + $0x28] sm:$0xff] %v1098_v1 }
 0x422   :  { %v1099_v2 = vpop.f32.mrb[28].mxu0 }
 0x423   :  { %v1100_v3 = vpop.f32.mrb[29].mxu0 }
 0x424   :  { %v1101_v4 = vadd.f32 %v1100_v3, %v1099_v2  ;;  %v1102_v5 = vpop.f32.mrb[30].mxu0 }
 0x425   :  { %v1103_v6 = vpop.f32.mrb[31].mxu0 }
 0x426   :  { %892 = vst [vmem:[#allocation10 + $0x30] sm:$0xff] %v1101_v4  ;;  %v1104_v7 = vadd.f32 %v1103_v6, %v1102_v5 }
 0x428   :  { %893 = vst [vmem:[#allocation10 + $0x38] sm:$0xff] %v1104_v7 }
 0x42a   :  { %v1105_v8 = vpop.f32.mrb[32].mxu0 }
 0x42b   :  { %v1106_v12 = vpop.f32.mrb[33].mxu0 }
 0x42c   :  { %v1107_v13 = vadd.f32 %v1106_v12, %v1105_v8  ;;  %v1108_v14 = vpop.f32.mrb[34].mxu0 }
 0x42d   :  { %v1109_v15 = vpop.f32.mrb[35].mxu0 }
 0x42e   :  { %894 = vst [vmem:[#allocation10 + $0x40] sm:$0xff] %v1107_v13  ;;  %v1110_v18 = vadd.f32 %v1109_v15, %v1108_v14 }
 0x430   :  { %895 = vst [vmem:[#allocation10 + $0x48] sm:$0xff] %v1110_v18 }
 0x432   :  { %v1111_v19 = vpop.f32.mrb[36].mxu0 }
 0x433   :  { %v1112_v20 = vpop.f32.mrb[37].mxu0 }
 0x434   :  { %v1113_v21 = vadd.f32 %v1112_v20, %v1111_v19  ;;  %v1114_v9 = vpop.f32.mrb[38].mxu0 }
 0x435   :  { %v1115_v11 = vpop.f32.mrb[39].mxu0 }
 0x436   :  { %896 = vst [vmem:[#allocation10 + $0x50] sm:$0xff] %v1113_v21  ;;  %v1116_v25 = vadd.f32 %v1115_v11, %v1114_v9 }
 0x438   :  { %897 = vst [vmem:[#allocation10 + $0x58] sm:$0xff] %v1116_v25 }
 0x43a   :  { %v1117_v26 = vpop.f32.mrb[40].mxu0 }
 0x43b   :  { %v1118_v16 = vpop.f32.mrb[41].mxu0 }
 0x43c   :  { %v1119_v17 = vadd.f32 %v1118_v16, %v1117_v26  ;;  %v1120_v27 = vpop.f32.mrb[42].mxu0 }
 0x43d   :  { %v1121_v29 = vpop.f32.mrb[43].mxu0 }
 0x43e   :  { %898 = vst [vmem:[#allocation10 + $0x60] sm:$0xff] %v1119_v17  ;;  %v1122_v30 = vadd.f32 %v1121_v29, %v1120_v27 }
 0x440   :  { %899 = vst [vmem:[#allocation10 + $0x68] sm:$0xff] %v1122_v30 }
 0x442   :  { %v1123_v31 = vpop.f32.mrb[44].mxu0 }
 0x443   :  { %v1124_v22 = vpop.f32.mrb[45].mxu0 }
 0x444   :  { %v1125_v32 = vadd.f32 %v1124_v22, %v1123_v31  ;;  %v1126_v23 = vpop.f32.mrb[46].mxu0 }
 0x445   :  { %v1127_v33 = vpop.f32.mrb[47].mxu0 }
 0x446   :  { %900 = vst [vmem:[#allocation10 + $0x70] sm:$0xff] %v1125_v32  ;;  %v1128_v35 = vadd.f32 %v1127_v33, %v1126_v23 }
 0x448   :  { %901 = vst [vmem:[#allocation10 + $0x78] sm:$0xff] %v1128_v35 }
 0x449   :  { %1349 = shalt.err (!%p1346_p8)
}
 0x44a   :  { %s1350_s13 = scalar_lea.hbm %s1600_s4, 2048 }
 0x44b   :  { %p1351_p9 = scmp.ne.s32.totalorder %s1600_s4, %s1350_s13  ;;  %p1354_p10 = scmp.lt.u32.totalorder %s1350_s13, %s1600_s4 }
 0x44d   :  { %p1356_p11 = pnand %p1354_p10, %p1351_p9 }
 0x44f   :  { %1359 = shalt.err (!%p1356_p11)
}
 0x450   :  { %s1375_s19 = smov 128   ;;  %s1376_s20 = smov 8  }
 0x451   :  { %913 = dma.vmem_to_hbm [thread:$0]  %s908_s27, 2048, %s1600_s4, [#allocation4], %s1375_s19, %s1375_s19, %s1376_s20  }
 0x452   :  { %1366 = dma.done.wait [#allocation4], 2048  }
 0x453   :  { %1367 = vsyncadd [#allocation4], 4294965248 }
 0x454   :  { %917 = vsyncpa [#allocation3], 1 }
 0x455   :  { %918 = vsyncpa [#allocation6], 1 }
 0x456   :  { %919 = vsyncpa [#allocation9], 1 }
 0x457   :  { %920 = vsyncpa [#allocation4], 1 }

</bundles_post_ra>
